<compile_context>
chip_gen: v5e
topology: v5e:2x2
jax: 0.10.0
libtpu: 0.0.40
codegen_flags: <defaults>
</compile_context>

<pallas_src>
import functools

import jax
import jax.numpy as jnp
from jax.experimental import pallas as pl
from jax.experimental.pallas import tpu as pltpu

PACK = 8  # rows packed per lane-dense row (8 * K = 128 lanes, 8 * N = 256 lanes)


def _round_up(a, m):
    return (a + m - 1) // m * m


def _linear_kernel(x_ref, w_ref, b_ref, o_ref):
    # MXU matmul with exact f32 accumulation + bias add on the VPU, all in VMEM.
    acc = jnp.dot(
        x_ref[...],
        w_ref[...],
        preferred_element_type=jnp.float32,
        precision=jax.lax.Precision.HIGHEST,
    )
    o_ref[...] = (acc + b_ref[...].astype(jnp.float32)).astype(o_ref.dtype)


def pack_linear_params(w, b):
    """Build the lane-packed weight/bias ONCE (cache these with the params).

    w: (K, N)  -> wp: (PACK*K, PACK*N) block-diagonal
    b: (N,)    -> bp: (1, PACK*N)      tiled
    """
    K, N = w.shape
    wp = jnp.kron(jnp.eye(PACK, dtype=w.dtype), w)        # block-diagonal
    bp = jnp.tile(b, PACK).reshape(1, PACK * N)
    return wp, bp


@functools.partial(jax.jit, static_argnames=("block_rows",))
def linea_embedding(x, wp, bp, *, block_rows=4096):
    """y = x @ w + b over the last axis of x, with packed params (wp, bp).

    x:  (..., K) float32
    wp: (PACK*K, PACK*N) packed weight from pack_linear_params
    bp: (1, PACK*N)      packed bias   from pack_linear_params
    block_rows: packed-row tile size (each packed row = PACK original rows).
    """
    KP, NP = wp.shape
    K, N = KP // PACK, NP // PACK
    assert x.shape[-1] == K, (x.shape, K)

    lead = x.shape[:-1]
    M = 1
    for d in lead:
        M *= d

    # Pad only to a multiple of PACK (<=7 rows); common case pads nothing.
    m_pad = _round_up(max(M, 1), PACK)
    x2d = x.reshape(M, K)
    if m_pad != M:
        x2d = jnp.pad(x2d, ((0, m_pad - M), (0, 0)))
    mp = m_pad // PACK
    xp = x2d.reshape(mp, KP)                               # lane-dense (…,128)

    # Row-tile choice: 8-aligned, capped so the grid has >=2 steps whenever
    # there are >=2 tiles (keeps both v7x TensorCores busy); tiny inputs use
    # the full dim as a single block (no masking at all).
    if mp <= 8:
        tmp = mp
    else:
        tmp = min(block_rows, _round_up(mp, 8))
        tmp = min(tmp, max(8, _round_up(-(-mp // 2), 8)))  # >= 2 grid steps
        tmp = _round_up(tmp, 8)

    grid = (pl.cdiv(mp, tmp),)

    # VMEM per step (tmp=4096): 2*(4096*128*4) + 2*(4096*256*4) + 128*256*4
    # + 256*4 ≈ 12.1 MiB — under the 32 MiB scoped limit everywhere.
    yp = pl.pallas_call(
        _linear_kernel,
        out_shape=jax.ShapeDtypeStruct((mp, NP), x.dtype),
        grid=grid,
        in_specs=[
            # x tile: pipelined (double-buffered) HBM<->VMEM.
            pl.BlockSpec((tmp, KP), lambda i: (i, 0)),
            # weight / bias: constant index_map -> VMEM-resident, single buffer.
            pl.BlockSpec((KP, NP), lambda i: (0, 0), pipeline_mode=pl.Buffered(1)),
            pl.BlockSpec((1, NP), lambda i: (0, 0), pipeline_mode=pl.Buffered(1)),
        ],
        out_specs=pl.BlockSpec((tmp, NP), lambda i: (i, 0)),
        compiler_params=pltpu.CompilerParams(
            dimension_semantics=("parallel",),             # megacore-shardable
            vmem_limit_bytes=32 * 1024 * 1024,
        ),
        cost_estimate=pl.CostEstimate(
            # What the kernel actually does (packed layout, 8x-inflated matmul).
            flops=2 * mp * KP * NP,
            transcendentals=0,
            bytes_accessed=4 * (mp * KP + KP * NP + mp * NP + NP),
        ),
    )(xp, wp, bp)

    y2d = yp.reshape(m_pad, N)                             # free reshape
    if m_pad != M:
        y2d = y2d[:M]                                      # only when padded
    return y2d.reshape(*lead, N)


def init_linear_params(key, n_regions, embed_dim, dtype=jnp.float32):
    """Deterministic init mirroring nn.Linear default (uniform +/- 1/sqrt(fan_in))."""
    kw, kb = jax.random.split(key)
    bound = 1.0 / (n_regions ** 0.5)
    # PyTorch weight is (embed_dim, n_regions); store transposed (K, N) for the kernel.
    w = jax.random.uniform(kw, (n_regions, embed_dim), dtype, minval=-bound, maxval=bound)
    b = jax.random.uniform(kb, (embed_dim,), dtype, minval=-bound, maxval=bound)
    return w, b


if __name__ == "__main__":
    # Small shapes consistent with the module: x = (batch, seq, n_regions)
    batch, seq, n_regions, embed_dim = 2, 8, 16, 32

    key = jax.random.PRNGKey(0)
    kx, kp, kx2 = jax.random.split(key, 3)
    x = jax.random.normal(kx, (batch, seq, n_regions), jnp.float32)
    w, b = init_linear_params(kp, n_regions, embed_dim)

    # Packed params built once and reused across calls (hoisted off the hot path).
    wp, bp = pack_linear_params(w, b)
    wp, bp = jax.block_until_ready((wp, bp))

    y = linea_embedding(x, wp, bp)
    jax.block_until_ready(y)

    y_ref = x @ w + b
    assert y.shape == (batch, seq, embed_dim), y.shape
    assert jnp.allclose(y, y_ref, atol=1e-5, rtol=1e-5), float(jnp.max(jnp.abs(y - y_ref)))

    # Second check: M % PACK != 0 and a multi-step grid with a partial last
    # block, exercising the minimal padding path, partial-block masking, and
    # the parallel row grid.
    x2 = jax.random.normal(kx2, (5, 123, n_regions), jnp.float32)
    y2 = linea_embedding(x2, wp, bp, block_rows=16)
    jax.block_until_ready(y2)
    y2_ref = x2 @ w + b
    assert y2.shape == (5, 123, embed_dim), y2.shape
    assert jnp.allclose(y2, y2_ref, atol=1e-5, rtol=1e-5), float(jnp.max(jnp.abs(y2 - y2_ref)))

    print("KERNEL_OK")
</pallas_src>

<mosaic_0001>
module attributes {stable_mosaic.version = 11 : i64} {
  func.func @_linear_kernel(%arg0: i32, %arg1: memref<2x128xf32, #tpu.memory_space<vmem>>, %arg2: memref<128x256xf32, #tpu.memory_space<vmem>>, %arg3: memref<1x256xf32, #tpu.memory_space<vmem>>, %arg4: memref<2x256xf32, #tpu.memory_space<vmem>>) attributes {dimension_semantics = [#tpu.dimension_semantics<parallel>], iteration_bounds = array<i64: 1>, scalar_prefetch = 0 : i64, scratch_operands = 0 : i64, tpu.core_type = #tpu.core_type<tc>, window_params = [{transform_indices = @transform_0, window_bounds = array<i64: 2, 128>}, {pipeline_mode = #tpu.pipeline_mode<synchronous>, transform_indices = @transform_1, window_bounds = array<i64: 128, 256>}, {pipeline_mode = #tpu.pipeline_mode<synchronous>, transform_indices = @transform_2, window_bounds = array<i64: 1, 256>}, {transform_indices = @transform_3, window_bounds = array<i64: 2, 256>}]} {
    %c0 = arith.constant 0 : index
    %c0_0 = arith.constant 0 : index
    %0 = vector.load %arg1[%c0, %c0_0] : memref<2x128xf32, #tpu.memory_space<vmem>>, vector<2x128xf32>
    %c0_1 = arith.constant 0 : index
    %c0_2 = arith.constant 0 : index
    %1 = vector.load %arg2[%c0_1, %c0_2] : memref<128x256xf32, #tpu.memory_space<vmem>>, vector<128x256xf32>
    %cst = arith.constant dense<0.000000e+00> : vector<2x256xf32>
    %2 = tpu.matmul %0, %1, %cst {dimension_numbers = #tpu.dot_dimension_numbers<[1], [0], [0], [1], [0, 0, 1, 1], [], []>, precision = #tpu.contract_precision<fp32>} : vector<2x128xf32>, vector<128x256xf32>, vector<2x256xf32> -> vector<2x256xf32>
    %c0_3 = arith.constant 0 : index
    %c0_4 = arith.constant 0 : index
    %3 = vector.load %arg3[%c0_3, %c0_4] : memref<1x256xf32, #tpu.memory_space<vmem>>, vector<1x256xf32>
    %4 = vector.broadcast %3 : vector<1x256xf32> to vector<2x256xf32>
    %5 = arith.addf %2, %4 : vector<2x256xf32>
    %c0_5 = arith.constant 0 : index
    %c0_6 = arith.constant 0 : index
    %6 = vector.load %arg4[%c0_5, %c0_6] : memref<2x256xf32, #tpu.memory_space<vmem>>, vector<2x256xf32>
    tpu.vector_store %arg4[%c0_5, %c0_6], %5 {strides = array<i32>} : memref<2x256xf32, #tpu.memory_space<vmem>>, vector<2x256xf32>,
    return
  }
  func.func @transform_0(%arg0: i32) -> (i32, i32) {
    %c0_i32 = arith.constant 0 : i32
    %c0_i32_0 = arith.constant 0 : i32
    return %arg0, %c0_i32 : i32, i32
  }
  func.func @transform_1(%arg0: i32) -> (i32, i32) {
    %c0_i32 = arith.constant 0 : i32
    %c0_i32_0 = arith.constant 0 : i32
    %c0_i32_1 = arith.constant 0 : i32
    return %c0_i32, %c0_i32_0 : i32, i32
  }
  func.func @transform_2(%arg0: i32) -> (i32, i32) {
    %c0_i32 = arith.constant 0 : i32
    %c0_i32_0 = arith.constant 0 : i32
    %c0_i32_1 = arith.constant 0 : i32
    return %c0_i32, %c0_i32_0 : i32, i32
  }
  func.func @transform_3(%arg0: i32) -> (i32, i32) {
    %c0_i32 = arith.constant 0 : i32
    %c0_i32_0 = arith.constant 0 : i32
    return %arg0, %c0_i32 : i32, i32
  }
}

</mosaic_0001>

<bundles_post_ra>
// kernel: linea_embedding.1
= control target key start
LH: loop header
LB: loop body
LE: loop exit
PB: predicated region body
PF: predicated region fallthrough
CT: control target
= control target key end

     0   :  { %8 = vsyncpa [#allocation3], 0  ;;  %s792_s15 = smov [#allocation2]   ;;  %s793_s17 = smov 256   ;;  %s1327_s0 = inlined_call_operand.vmem [shape: f32[2,128], index: 0, kind: input, shape index: {}]   ;;  %s1328_s1 = inlined_call_operand.hbm [shape: f32[128,256], index: 1, kind: input, shape index: {}]   ;;  %s1329_s2 = inlined_call_operand.vmem [shape: f32[1,256], index: 2, kind: input, shape index: {}]   ;;  %s1330_s3 = inlined_call_operand.vmem [shape: f32[2,256], index: 3, kind: output, shape index: {}]  }
   0x1   :  { %s15_s14 = sshll.u32 %s1328_s1, 4  ;;  %s17_s16 = sshll.u32 %s792_s15, 4  ;;  %s16_s14 = int_to_ptr.hbm [resolvable:$true] %s15_s14  ;;  %s18_s16 = int_to_ptr.vmem [resolvable:$true] %s17_s16 }
   0x2   :  { %s794_s18 = smov 16  }
   0x3   :  { %23 = dma.hbm_to_vmem [thread:$0]  %s16_s14, 4096, %s18_s16, [#allocation3], %s793_s17, %s793_s17, %s794_s18  }
   0x4   :  { %790 = dma.done.wait [#allocation3], 4096  }
   0x5   :  { %791 = vsyncadd [#allocation3], 4294963200  ;;  %v61_v0 = vld [vmem:[#allocation2 + $0xf0] sm:$0xff]  ;;  %v59_v1 = vld [vmem:[#allocation2 + $0xe0] sm:$0xff]  ;;  %vm754_vm0 = vcmask 1041408  }
   0x6   :  { %v57_v2 = vld [vmem:[#allocation2 + $0xd0] sm:$0xff]  ;;  %v818_v3 = vand.u32 4294901760, %v61_v0  ;;  %v820_v4 = vand.u32 4294901760, %v59_v1  ;;  %v55_v6 = vld [vmem:[#allocation2 + $0xc0] sm:$0xff]  ;;  %v62_v60 = vld [vmem:[#allocation2 + $0xf8] sm:$0xff] }
   0x7   :  { %v822_v5 = vand.u32 4294901760, %v57_v2  ;;  %v53_v7 = vld [vmem:[#allocation2 + $0xb0] sm:$0xff]  ;;  %v51_v8 = vld [vmem:[#allocation2 + $0xa0] sm:$0xff]  ;;  %v824_v9 = vand.u32 4294901760, %v55_v6  ;;  %v60_v63 = vld [vmem:[#allocation2 + $0xe8] sm:$0xff] }
   0x8   :  { %v826_v10 = vand.u32 4294901760, %v53_v7  ;;  %v828_v11 = vand.u32 4294901760, %v51_v8  ;;  %v49_v12 = vld [vmem:[#allocation2 + $0x90] sm:$0xff]  ;;  %v47_v13 = vld [vmem:[#allocation2 + $0x80] sm:$0xff]  ;;  %v831_v14 = vsub.f32 %v61_v0, %v818_v3  ;;  %70 = vmatpush.msra.mxu0 %v818_v3  ;;  %v835_v15 = vsub.f32 %v59_v1, %v820_v4  ;;  %266 = vmatpush.msra.mxu3 %v818_v3 }
   0x9   :  { %v839_v16 = vsub.f32 %v57_v2, %v822_v5  ;;  %v841_v17 = vand.u32 4294901760, %v49_v12  ;;  %v844_v18 = vsub.f32 %v55_v6, %v824_v9  ;;  %v857_v24 = vand.u32 4294901760, %v47_v13  ;;  %v45_v25 = vld [vmem:[#allocation2 + $0x70] sm:$0xff]  ;;  %v43_v34 = vld [vmem:[#allocation2 + $0x60] sm:$0xff] }
   0xa   :  { %v847_v19 = vsub.f32 %v53_v7, %v826_v10  ;;  %v850_v20 = vsub.f32 %v51_v8, %v828_v11  ;;  %213 = vmatpush.msra.mxu2 %v831_v14  ;;  %72 = vmatpush.msra.mxu0 %v820_v4  ;;  %v1345_v21 = vand.u32 4294901760, %v831_v14  ;;  %v1344_v22 = vand.u32 4294901760, %v835_v15  ;;  %v41_v35 = vld [vmem:[#allocation2 + $0x50] sm:$0xff]  ;;  %v39_v40 = vld [vmem:[#allocation2 + $0x40] sm:$0xff] }
   0xb   :  { %v1343_v23 = vand.u32 4294901760, %v839_v16  ;;  %268 = vmatpush.msra.mxu3 %v820_v4  ;;  %v1340_v26 = vand.u32 4294901760, %v844_v18  ;;  %v862_v27 = vsub.f32 %v49_v12, %v841_v17  ;;  %v878_v33 = vand.u32 4294901760, %v45_v25  ;;  %v37_v48 = vld [vmem:[#allocation2 + $0x30] sm:$0xff]  ;;  %v35_v53 = vld [vmem:[#allocation2 + $0x20] sm:$0xff] }
   0xc   :  { %216 = vmatpush.msra.mxu2 %v835_v15  ;;  %v113_v28 = vsub.f32 %v831_v14, %v1345_v21  ;;  %74 = vmatpush.msra.mxu0 %v822_v5  ;;  %v119_v29 = vsub.f32 %v835_v15, %v1344_v22  ;;  %v1339_v31 = vand.u32 4294901760, %v847_v19  ;;  %v1337_v32 = vand.u32 4294901760, %v850_v20  ;;  %v33_v59 = vld [vmem:[#allocation2 + $0x10] sm:$0xff]  ;;  %v31_v6 = vld [vmem:[#allocation2] sm:$0xff] }
   0xd   :  { %v125_v30 = vsub.f32 %v839_v16, %v1343_v23  ;;  %270 = vmatpush.msra.mxu3 %v822_v5  ;;  %v131_v38 = vsub.f32 %v844_v18, %v1340_v26  ;;  %v886_v39 = vsub.f32 %v47_v13, %v857_v24  ;;  %v1336_v41 = vand.u32 4294901760, %v862_v27  ;;  %v58_v13 = vld [vmem:[#allocation2 + $0xd8] sm:$0xff] }
   0xe   :  { %v114_v36 = vand.u32 4294901760, %v113_v28  ;;  %219 = vmatpush.msra.mxu2 %v839_v16  ;;  %v120_v37 = vand.u32 4294901760, %v119_v29  ;;  %76 = vmatpush.msra.mxu0 %v824_v9  ;;  %v891_v42 = vsub.f32 %v45_v25, %v878_v33  ;;  %v137_v44 = vsub.f32 %v847_v19, %v1339_v31  ;;  %v46_v26 = vld [vmem:[#allocation2 + $0x78] sm:$0xff] }
   0xf   :  { %272 = vmatpush.msra.mxu3 %v824_v9  ;;  %v126_v43 = vand.u32 4294901760, %v125_v30  ;;  %v897_v45 = vand.u32 4294901760, %v43_v34  ;;  %v899_v46 = vand.u32 4294901760, %v41_v35  ;;  %v903_v47 = vand.u32 4294901760, %v39_v40 }
  0x10   :  { %115 = vmatpush.msra.mxu1 %v114_v36  ;;  %222 = vmatpush.msra.mxu2 %v844_v18  ;;  %v132_v49 = vand.u32 4294901760, %v131_v38  ;;  %v143_v50 = vsub.f32 %v850_v20, %v1337_v32  ;;  %v1335_v51 = vand.u32 4294901760, %v886_v39  ;;  %v1334_v54 = vand.u32 4294901760, %v891_v42  ;;  %v48_v32 = vld [vmem:[#allocation2 + $0x88] sm:$0xff] }
  0x11   :  { %78 = vmatpush.msra.mxu0 %v826_v10  ;;  %274 = vmatpush.msra.mxu3 %v826_v10  ;;  %v911_v52 = vsub.f32 %v43_v34, %v897_v45  ;;  %v138_v55 = vand.u32 4294901760, %v137_v44  ;;  %v149_v56 = vsub.f32 %v862_v27, %v1336_v41  ;;  %v921_v57 = vsub.f32 %v41_v35, %v899_v46 }
  0x12   :  { %121 = vmatpush.msra.mxu1 %v120_v37  ;;  %225 = vmatpush.msra.mxu2 %v847_v19  ;;  %v923_v58 = vand.u32 4294901760, %v37_v48  ;;  %v928_v61 = vsub.f32 %v39_v40, %v903_v47  ;;  %v930_v62 = vand.u32 4294901760, %v35_v53  ;;  %v144_v0 = vand.u32 4294901760, %v143_v50  ;;  %v56_v37 = vld [vmem:[#allocation2 + $0xc8] sm:$0xff]  ;;  %v54_v50 = vld [vmem:[#allocation2 + $0xb8] sm:$0xff] }
  0x13   :  { %80 = vmatpush.msra.mxu0 %v828_v11  ;;  %276 = vmatpush.msra.mxu3 %v828_v11  ;;  %v155_v1 = vsub.f32 %v886_v39, %v1335_v51  ;;  %v1332_v2 = vand.u32 4294901760, %v911_v52  ;;  %v161_v7 = vsub.f32 %v891_v42, %v1334_v54  ;;  %v942_v8 = vand.u32 4294901760, %v33_v59 }
  0x14   :  { %127 = vmatpush.msra.mxu1 %v126_v43  ;;  %228 = vmatpush.msra.mxu2 %v850_v20  ;;  %v944_v12 = vand.u32 4294901760, %v62_v60  ;;  %v150_v25 = vand.u32 4294901760, %v149_v56  ;;  %v1331_v28 = vand.u32 4294901760, %v921_v57  ;;  %v949_v29 = vsub.f32 %v37_v48, %v923_v58 }
  0x15   :  { %82 = vmatpush.msra.mxu0 %v841_v17  ;;  %278 = vmatpush.msra.mxu3 %v841_v17  ;;  %1362 = vst [vmem:[#allocation5_spill] sm:$0xff] %v942_v8  ;;  %v951_v30 = vand.u32 4294901760, %v60_v63  ;;  %v1333_v34 = vand.u32 4294901760, %v928_v61  ;;  %v957_v35 = vsub.f32 %v35_v53, %v930_v62  ;;  %v959_v36 = vand.u32 4294901760, %v31_v6 }
  0x16   :  { %133 = vmatpush.msra.mxu1 %v132_v49  ;;  %231 = vmatpush.msra.mxu2 %v862_v27  ;;  %1363 = vst [vmem:[#allocation6_spill] sm:$0xff] %v944_v12  ;;  %v156_v38 = vand.u32 4294901760, %v155_v1  ;;  %v167_v40 = vsub.f32 %v911_v52, %v1332_v2  ;;  %v966_v43 = vsub.f32 %v62_v60, %v944_v12  ;;  %v968_v44 = vand.u32 4294901760, %v58_v13 }
  0x17   :  { %84 = vmatpush.msra.mxu0 %v857_v24  ;;  %280 = vmatpush.msra.mxu3 %v857_v24  ;;  %1364 = vst [vmem:[#allocation7_spill] sm:$0xff] %v959_v36  ;;  %v162_v48 = vand.u32 4294901760, %v161_v7  ;;  %v973_v49 = vsub.f32 %v33_v59, %v942_v8  ;;  %v173_v53 = vsub.f32 %v921_v57, %v1331_v28  ;;  %v983_v60 = vand.u32 4294901760, %v56_v37 }
  0x18   :  { %139 = vmatpush.msra.mxu1 %v138_v55  ;;  %234 = vmatpush.msra.mxu2 %v886_v39  ;;  %v1338_v55 = vand.u32 4294901760, %v949_v29  ;;  %v981_v56 = vsub.f32 %v60_v63, %v951_v30  ;;  %v179_v59 = vsub.f32 %v928_v61, %v1333_v34  ;;  %v1341_v1 = vand.u32 4294901760, %v957_v35 }
  0x19   :  { %86 = vmatpush.msra.mxu0 %v878_v33  ;;  %282 = vmatpush.msra.mxu3 %v878_v33  ;;  %v992_v7 = vsub.f32 %v31_v6, %v959_v36  ;;  %v168_v63 = vand.u32 4294901760, %v167_v40  ;;  %v997_v28 = vsub.f32 %v58_v13, %v968_v44  ;;  %v999_v2 = vand.u32 4294901760, %v54_v50  ;;  %v50_v6 = vld [vmem:[#allocation2 + $0x98] sm:$0xff] }
  0x1a   :  { %145 = vmatpush.msra.mxu1 %v144_v0  ;;  %237 = vmatpush.msra.mxu2 %v891_v42  ;;  %1365 = vst [vmem:[#allocation8_spill] sm:$0xff] %v981_v56  ;;  %v52_v0 = vld [vmem:[#allocation2 + $0xa8] sm:$0xff]  ;;  %v1347_v34 = vand.u32 4294901760, %v973_v49  ;;  %v185_v13 = vsub.f32 %v949_v29, %v1338_v55  ;;  %v1346_v40 = vand.u32 4294901760, %v981_v56  ;;  %v1012_v51 = vsub.f32 %v56_v37, %v983_v60 }
  0x1b   :  { %88 = vmatpush.msra.mxu0 %v897_v45  ;;  %284 = vmatpush.msra.mxu3 %v897_v45  ;;  %1366 = vst [vmem:[#allocation9_spill] sm:$0xff] %v997_v28  ;;  %v1004_v54 = vand.u32 4294901760, %v52_v0  ;;  %v180_v41 = vand.u32 4294901760, %v179_v59  ;;  %v1352_v55 = vand.u32 4294901760, %v997_v28  ;;  %v1026_v59 = vsub.f32 %v54_v50, %v999_v2 }
  0x1c   :  { %151 = vmatpush.msra.mxu1 %v150_v25  ;;  %240 = vmatpush.msra.mxu2 %v911_v52  ;;  %v1342_v25 = vand.u32 4294901760, %v966_v43  ;;  %1367 = vst [vmem:[#allocation10_spill] sm:$0xff] %v1012_v51  ;;  %v1028_v31 = vand.u32 4294901760, %v50_v6  ;;  %v460_v50 = vsub.f32 %v981_v56, %v1346_v40  ;;  %v1043_v22 = vand.u32 4294901760, %v48_v32 }
  0x1d   :  { %90 = vmatpush.msra.mxu0 %v899_v46  ;;  %286 = vmatpush.msra.mxu3 %v899_v46 }
  0x1e   :  { %157 = vmatpush.msra.mxu1 %v156_v38  ;;  %243 = vmatpush.msra.mxu2 %v921_v57  ;;  %v174_v38 = vand.u32 4294901760, %v173_v53  ;;  %v1350_v53 = vand.u32 4294901760, %v992_v7  ;;  %v454_v37 = vsub.f32 %v966_v43, %v1342_v25  ;;  %v186_v25 = vand.u32 4294901760, %v185_v13  ;;  %v44_v13 = vld [vmem:[#allocation2 + $0x68] sm:$0xff] }
  0x1f   :  { %92 = vmatpush.msra.mxu0 %v903_v47  ;;  %288 = vmatpush.msra.mxu3 %v903_v47  ;;  %v1068_v23 = vsub.f32 %v48_v32, %v1043_v22 }
  0x20   :  { %163 = vmatpush.msra.mxu1 %v162_v48  ;;  %246 = vmatpush.msra.mxu2 %v928_v61  ;;  %v191_v48 = vsub.f32 %v957_v35, %v1341_v1  ;;  %v1036_v1 = vsub.f32 %v52_v0, %v1004_v54  ;;  %v203_v0 = vsub.f32 %v992_v7, %v1350_v53  ;;  %v455_v40 = vand.u32 4294901760, %v454_v37 }
  0x21   :  { %94 = vmatpush.msra.mxu0 %v923_v58  ;;  %290 = vmatpush.msra.mxu3 %v923_v58  ;;  %v461_v37 = vand.u32 4294901760, %v460_v50 }
  0x22   :  { %169 = vmatpush.msra.mxu1 %v168_v63  ;;  %249 = vmatpush.msra.mxu2 %v949_v29  ;;  %v197_v63 = vsub.f32 %v973_v49, %v1347_v34  ;;  %v192_v21 = vand.u32 4294901760, %v191_v48  ;;  %v466_v34 = vsub.f32 %v997_v28, %v1352_v55  ;;  %v1058_v48 = vsub.f32 %v50_v6, %v1028_v31  ;;  %v40_v28 = vld [vmem:[#allocation2 + $0x48] sm:$0xff] }
  0x23   :  { %96 = vmatpush.msra.mxu0 %v930_v62  ;;  %292 = vmatpush.msra.mxu3 %v930_v62  ;;  %v1070_v6 = vand.u32 4294901760, %v44_v13  ;;  %v204_v53 = vand.u32 4294901760, %v203_v0 }
  0x24   :  { %175 = vmatpush.msra.mxu1 %v174_v38  ;;  %252 = vmatpush.msra.mxu2 %v957_v35  ;;  %v1050_v38 = vand.u32 4294901760, %v46_v26  ;;  %v198_v56 = vand.u32 4294901760, %v197_v63  ;;  %v1369_v63 = vand.u32 4294901760, %v831_v14  ;;  %v467_v50 = vand.u32 4294901760, %v466_v34 }
  0x25   :  { %98 = vmatpush.msra.mxu0 %v942_v8  ;;  %294 = vmatpush.msra.mxu3 %v942_v8  ;;  %v1368_v8 = vand.u32 4294901760, %v1012_v51  ;;  %v1371_v14 = vand.u32 4294901760, %v835_v15  ;;  %v1092_v0 = vsub.f32 %v44_v13, %v1070_v6 }
  0x26   :  { %181 = vmatpush.msra.mxu1 %v180_v41  ;;  %255 = vmatpush.msra.mxu2 %v973_v49  ;;  %v42_v41 = vld [vmem:[#allocation2 + $0x58] sm:$0xff] }
  0x27   :  { %100 = vmatpush.msra.mxu0 %v959_v36  ;;  %296 = vmatpush.msra.mxu3 %v959_v36  ;;  %v472_v55 = vsub.f32 %v1012_v51, %v1368_v8  ;;  %v1370_v8 = vand.u32 4294901760, %v1026_v59  ;;  %v489_v51 = vand.u32 4294901760, %v1058_v48  ;;  %v1082_v36 = vand.u32 4294901760, %v42_v41 }
  0x28   :  { %187 = vmatpush.msra.mxu1 %v186_v25  ;;  %258 = vmatpush.msra.mxu2 %v992_v7  ;;  %v1076_v25 = vsub.f32 %v46_v26, %v1050_v38  ;;  %v1372_v26 = vand.u32 4294901760, %v1036_v1 }
  0x29   :  { %307 = vmatpush.msrb.mxu0 %v1369_v63  ;;  %456 = vmatpush.msrb.mxu3 %v455_v40  ;;  %v478_v32 = vsub.f32 %v1026_v59, %v1370_v8  ;;  %v473_v34 = vand.u32 4294901760, %v472_v55  ;;  %v1361_v40 = vand.u32 4294901760, %v1068_v23  ;;  %v1094_v63 = vand.u32 4294901760, %v40_v28 }
  0x2a   :  { %411 = vmatpush.msrb.mxu2 %v944_v12  ;;  %193 = vmatpush.msra.mxu1 %v192_v21  ;;  %v38_v12 = vld [vmem:[#allocation2 + $0x38] sm:$0xff]  ;;  %v484_v21 = vsub.f32 %v1036_v1, %v1372_v26  ;;  %v1373_v8 = vand.u32 4294901760, %v839_v16  ;;  %v1360_v15 = vand.u32 4294901760, %v1076_v25  ;;  %v36_v26 = vld [vmem:[#allocation2 + $0x28] sm:$0xff]  ;;  %v1106_v13 = vsub.f32 %v42_v41, %v1082_v36 }
  0x2b   :  { %311 = vmatpush.msrb.mxu0 %v1371_v14  ;;  %462 = vmatpush.msrb.mxu3 %v461_v37  ;;  %v1100_v14 = vand.u32 4294901760, %v38_v12  ;;  %v479_v55 = vand.u32 4294901760, %v478_v32  ;;  %v34_v37 = vld [vmem:[#allocation2 + $0x18] sm:$0xff]  ;;  %v1117_v32 = vsub.f32 %v40_v28, %v1094_v63  ;;  %v1119_v41 = vand.u32 4294901760, %v36_v26 }
  0x2c   :  { %413 = vmatpush.msrb.mxu2 %v951_v30  ;;  %199 = vmatpush.msra.mxu1 %v198_v56  ;;  %v490_v56 = vsub.f32 %v1058_v48, %v489_v51  ;;  %v485_v16 = vand.u32 4294901760, %v484_v21  ;;  %v1375_v21 = vand.u32 4294901760, %v847_v19  ;;  %v513_v28 = vand.u32 4294901760, %v1106_v13 }
  0x2d   :  { %315 = vmatpush.msrb.mxu0 %v1373_v8  ;;  %468 = vmatpush.msrb.mxu3 %v467_v50  ;;  %v1374_v8 = vand.u32 4294901760, %v844_v18  ;;  %v507_v50 = vand.u32 4294901760, %v1092_v0  ;;  %v1127_v18 = vsub.f32 %v38_v12, %v1100_v14  ;;  %v1376_v12 = vand.u32 4294901760, %v850_v20 }
  0x2e   :  { %415 = vmatpush.msrb.mxu2 %v968_v44  ;;  %205 = vmatpush.msra.mxu1 %v204_v53  ;;  %v496_v53 = vsub.f32 %v1068_v23, %v1361_v40  ;;  %v1377_v20 = vand.u32 4294901760, %v862_v27 }
  0x2f   :  { %319 = vmatpush.msrb.mxu0 %v1374_v8  ;;  %474 = vmatpush.msrb.mxu3 %v473_v34  ;;  %v491_v34 = vand.u32 4294901760, %v490_v56  ;;  %v1132_v8 = vand.u32 4294901760, %v34_v37  ;;  %v519_v56 = vand.u32 4294901760, %v1117_v32  ;;  %v525_v40 = vand.u32 4294901760, %v1127_v18 }
  0x30   :  { %374 = vmatpush.msrb.mxu1 %v818_v3  ;;  %417 = vmatpush.msrb.mxu2 %v983_v60  ;;  %v502_v3 = vsub.f32 %v1076_v25, %v1360_v15  ;;  %v30_v15 = vld [vmem:[%s1327_s0] sm:$0x3]  ;;  %v497_v19 = vand.u32 4294901760, %v496_v53 }
  0x31   :  { %323 = vmatpush.msrb.mxu0 %v1375_v21  ;;  %480 = vmatpush.msrb.mxu3 %v479_v55  ;;  %v508_v55 = vsub.f32 %v1092_v0, %v507_v50 }
  0x32   :  { %376 = vmatpush.msrb.mxu1 %v820_v4  ;;  %419 = vmatpush.msrb.mxu2 %v999_v2  ;;  %v32_v4 = vld [vmem:[#allocation2 + $0x8] sm:$0xff]  ;;  %v503_v21 = vand.u32 4294901760, %v502_v3  ;;  %v520_v3 = vsub.f32 %v1117_v32, %v519_v56 }
  0x33   :  { %327 = vmatpush.msrb.mxu0 %v1376_v12  ;;  %486 = vmatpush.msrb.mxu3 %v485_v16  ;;  %v514_v16 = vsub.f32 %v1106_v13, %v513_v28  ;;  %v1156_v53 = vand.u32 4294901760, %v32_v4  ;;  %v1161_v12 = vand.u32 4294901760, %v30_v15  ;;  %v509_v27 = vand.u32 4294901760, %v508_v55 }
  0x34   :  { %378 = vmatpush.msrb.mxu1 %v822_v5  ;;  %421 = vmatpush.msrb.mxu2 %v1004_v54  ;;  %v1146_v5 = vsub.f32 %v36_v26, %v1119_v41  ;;  %v1159_v26 = vsub.f32 %v34_v37, %v1132_v8  ;;  %v1379_v37 = vand.u32 4294901760, %v891_v42  ;;  %v521_v42 = vand.u32 4294901760, %v520_v3 }
  0x35   :  { %331 = vmatpush.msrb.mxu0 %v1377_v20  ;;  %492 = vmatpush.msrb.mxu3 %v491_v34  ;;  %v1180_v55 = vsub.f32 %v30_v15, %v1161_v12  ;;  %v1183_v20 = vsub.f32 %v32_v4, %v1156_v53  ;;  %v1381_v15 = vand.u32 4294901760, %v921_v57 }
  0x36   :  { %380 = vmatpush.msrb.mxu1 %v824_v9  ;;  %423 = vmatpush.msrb.mxu2 %v1028_v31  ;;  %v1378_v9 = vand.u32 4294901760, %v886_v39  ;;  %v531_v34 = vand.u32 4294901760, %v1146_v5  ;;  %v515_v39 = vand.u32 4294901760, %v514_v16 }
  0x37   :  { %498 = vmatpush.msrb.mxu3 %v497_v19  ;;  %v537_v19 = vand.u32 4294901760, %v1159_v26  ;;  %v543_v4 = vand.u32 4294901760, %v1183_v20  ;;  %v1201_v16 = vand.u32 4294901760, %v1180_v55  ;;  %261 = vmatmul.f32.vlgmr.msra.gmra.mxu2 %v1180_v55 }
  0x38   :  { %382 = vmatpush.msrb.mxu1 %v826_v10  ;;  %425 = vmatpush.msrb.mxu2 %v1043_v22  ;;  %v526_v10 = vsub.f32 %v1127_v18, %v525_v40 }
  0x39   :  { %335 = vmatpush.msrb.mxu0 %v1378_v9  ;;  %504 = vmatpush.msrb.mxu3 %v503_v21  ;;  %v532_v21 = vsub.f32 %v1146_v5, %v531_v34  ;;  %v1383_v9 = vand.u32 4294901760, %v949_v29  ;;  %v104_v3 = vsub.f32 %v1180_v55, %v1201_v16 }
  0x3a   :  { %384 = vmatpush.msrb.mxu1 %v828_v11  ;;  %427 = vmatpush.msrb.mxu2 %v1050_v38  ;;  %v1380_v11 = vand.u32 4294901760, %v911_v52  ;;  %v538_v52 = vsub.f32 %v1159_v26, %v537_v19 }
  0x3b   :  { %339 = vmatpush.msrb.mxu0 %v1379_v37  ;;  %510 = vmatpush.msrb.mxu3 %v509_v27  ;;  %v533_v57 = vand.u32 4294901760, %v532_v21  ;;  %v1391_v37 = vld [vmem:[#allocation6_spill] sm:$0xff] }
  0x3c   :  { %386 = vmatpush.msrb.mxu1 %v841_v17  ;;  %429 = vmatpush.msrb.mxu2 %v1070_v6  ;;  %v527_v17 = vand.u32 4294901760, %v526_v10  ;;  %v539_v27 = vand.u32 4294901760, %v538_v52  ;;  %v105_v10 = vand.u32 4294901760, %v104_v3 }
  0x3d   :  { %343 = vmatpush.msrb.mxu0 %v1380_v11  ;;  %516 = vmatpush.msrb.mxu3 %v515_v39 }
  0x3e   :  { %388 = vmatpush.msrb.mxu1 %v857_v24  ;;  %431 = vmatpush.msrb.mxu2 %v1082_v36  ;;  %v1382_v24 = vand.u32 4294901760, %v928_v61  ;;  %v1385_v61 = vand.u32 4294901760, %v973_v49 }
  0x3f   :  { %347 = vmatpush.msrb.mxu0 %v1381_v15  ;;  %522 = vmatpush.msrb.mxu3 %v521_v42  ;;  %v1397_v42 = vand.u32 4294901760, %v1026_v59 }
  0x40   :  { %390 = vmatpush.msrb.mxu1 %v878_v33  ;;  %433 = vmatpush.msrb.mxu2 %v1094_v63  ;;  %v544_v33 = vsub.f32 %v1183_v20, %v543_v4 }
  0x41   :  { %351 = vmatpush.msrb.mxu0 %v1382_v24  ;;  %528 = vmatpush.msrb.mxu3 %v527_v17 }
  0x42   :  { %392 = vmatpush.msrb.mxu1 %v897_v45  ;;  %435 = vmatpush.msrb.mxu2 %v1100_v14  ;;  %v1384_v45 = vand.u32 4294901760, %v957_v35  ;;  %v545_v29 = vand.u32 4294901760, %v544_v33  ;;  %v1388_v35 = vld [vmem:[#allocation5_spill] sm:$0xff] }
  0x43   :  { %355 = vmatpush.msrb.mxu0 %v1383_v9  ;;  %534 = vmatpush.msrb.mxu3 %v533_v57 }
  0x44   :  { %394 = vmatpush.msrb.mxu1 %v899_v46  ;;  %437 = vmatpush.msrb.mxu2 %v1119_v41  ;;  %v1386_v46 = vand.u32 4294901760, %v992_v7  ;;  %v1392_v7 = vld [vmem:[#allocation7_spill] sm:$0xff] }
  0x45   :  { %359 = vmatpush.msrb.mxu0 %v1384_v45  ;;  %540 = vmatpush.msrb.mxu3 %v539_v27 }
  0x46   :  { %396 = vmatpush.msrb.mxu1 %v903_v47  ;;  %439 = vmatpush.msrb.mxu2 %v1132_v8  ;;  %v1387_v47 = vand.u32 4294901760, %v966_v43 }
  0x47   :  { %363 = vmatpush.msrb.mxu0 %v1385_v61  ;;  %546 = vmatpush.msrb.mxu3 %v545_v29 }
  0x48   :  { %398 = vmatpush.msrb.mxu1 %v923_v58  ;;  %441 = vmatpush.msrb.mxu2 %v1156_v53  ;;  %v1389_v58 = vld [vmem:[#allocation8_spill] sm:$0xff] }
  0x49   :  { %367 = vmatpush.msrb.mxu0 %v1386_v46  ;;  %300 = vmatmul.f32.vlgmr.msra.gmra.mxu3 %v1201_v16  ;;  %v1390_v49 = vand.u32 4294901760, %v1389_v58 }
  0x4a   :  { %400 = vmatpush.msrb.mxu1 %v930_v62  ;;  %648 = vmatpush.msra.mxu2 %v1387_v47  ;;  %v1393_v62 = vld [vmem:[#allocation9_spill] sm:$0xff] }
  0x4b   :  { %106 = vmatmul.f32.vlgmr.msra.gmra.mxu0 %v105_v10  ;;  %715 = vmatpush.msra.mxu3 %v1391_v37  ;;  %v1394_v39 = vand.u32 4294901760, %v1393_v62 }
  0x4c   :  { %402 = vmatpush.msrb.mxu1 %v1388_v35  ;;  %554 = vmatpush.msra.mxu0 %v966_v43  ;;  %v1395_v43 = vld [vmem:[#allocation10_spill] sm:$0xff] }
  0x4d   :  { %652 = vmatpush.msra.mxu2 %v1390_v49  ;;  %207 = vmatmul.f32.vlgmr.msra.gmra.mxu1 %v1161_v12  ;;  %v1396_v11 = vand.u32 4294901760, %v1395_v43 }
  0x4e   :  { %404 = vmatpush.msrb.mxu1 %v1392_v7  ;;  %557 = vmatpush.msra.mxu0 %v1389_v58 }
  0x4f   :  { %656 = vmatpush.msra.mxu2 %v1394_v39  ;;  %717 = vmatpush.msra.mxu3 %v951_v30 }
  0x50   :  { %607 = vmatpush.msra.mxu1 %v1391_v37  ;;  %560 = vmatpush.msra.mxu0 %v1393_v62 }
  0x51   :  { %660 = vmatpush.msra.mxu2 %v1396_v11  ;;  %719 = vmatpush.msra.mxu3 %v968_v44 }
  0x52   :  { %609 = vmatpush.msra.mxu1 %v951_v30  ;;  %563 = vmatpush.msra.mxu0 %v1395_v43  ;;  %v1398_v30 = vand.u32 4294901760, %v1036_v1 }
  0x53   :  { %664 = vmatpush.msra.mxu2 %v1397_v42  ;;  %721 = vmatpush.msra.mxu3 %v983_v60 }
  0x54   :  { %611 = vmatpush.msra.mxu1 %v968_v44  ;;  %369 = vmatmul.f32.vlgmr.msrb.gmra.mxu0 %v1161_v12  ;;  %v1399_v44 = vand.u32 4294901760, %v1068_v23 }
  0x55   :  { %566 = vmatpush.msra.mxu0 %v1026_v59  ;;  %668 = vmatpush.msra.mxu2 %v1398_v30 }
  0x56   :  { %613 = vmatpush.msra.mxu1 %v983_v60  ;;  %723 = vmatpush.msra.mxu3 %v999_v2 }
  0x57   :  { %406 = vmatmul.f32.vlgmr.msrb.gmra.mxu1 %v1161_v12  ;;  %569 = vmatpush.msra.mxu0 %v1036_v1 }
  0x58   :  { %615 = vmatpush.msra.mxu1 %v999_v2  ;;  %672 = vmatpush.msra.mxu2 %v489_v51  ;;  %v1400_v2 = vand.u32 4294901760, %v1076_v25 }
  0x59   :  { %725 = vmatpush.msra.mxu3 %v1004_v54  ;;  %572 = vmatpush.msra.mxu0 %v1058_v48 }
  0x5a   :  { %617 = vmatpush.msra.mxu1 %v1004_v54  ;;  %676 = vmatpush.msra.mxu2 %v1399_v44 }
  0x5b   :  { %727 = vmatpush.msra.mxu3 %v1028_v31  ;;  %575 = vmatpush.msra.mxu0 %v1068_v23  ;;  %v63_v23 = vld [vmem:[%s1329_s2] sm:$0x3] }
  0x5c   :  { %619 = vmatpush.msra.mxu1 %v1028_v31  ;;  %680 = vmatpush.msra.mxu2 %v1400_v2  ;;  %v65_v51 = vperm.slane %v63_v23, 0  ;;  %v66_v59 = vperm.slane %v63_v23, 1 }
  0x5d   :  { %729 = vmatpush.msra.mxu3 %v1043_v22  ;;  %578 = vmatpush.msra.mxu0 %v1076_v25 }
  0x5e   :  { %621 = vmatpush.msra.mxu1 %v1043_v22  ;;  %684 = vmatpush.msra.mxu2 %v507_v50 }
  0x5f   :  { %731 = vmatpush.msra.mxu3 %v1050_v38  ;;  %581 = vmatpush.msra.mxu0 %v1092_v0 }
  0x60   :  { %623 = vmatpush.msra.mxu1 %v1050_v38  ;;  %688 = vmatpush.msra.mxu2 %v513_v28 }
  0x61   :  { %733 = vmatpush.msra.mxu3 %v1070_v6  ;;  %584 = vmatpush.msra.mxu0 %v1106_v13 }
  0x62   :  { %625 = vmatpush.msra.mxu1 %v1070_v6  ;;  %692 = vmatpush.msra.mxu2 %v519_v56 }
  0x63   :  { %735 = vmatpush.msra.mxu3 %v1082_v36  ;;  %447 = vmatmul.f32.vlgmr.msrb.gmra.mxu2 %v105_v10 }
  0x64   :  { %587 = vmatpush.msra.mxu0 %v1117_v32  ;;  %627 = vmatpush.msra.mxu1 %v1082_v36 }
  0x65   :  { %696 = vmatpush.msra.mxu2 %v525_v40  ;;  %737 = vmatpush.msra.mxu3 %v1094_v63 }
  0x66   :  { %548 = vmatmul.f32.vlgmr.msrb.gmra.mxu3 %v1161_v12  ;;  %590 = vmatpush.msra.mxu0 %v1127_v18 }
  0x67   :  { %629 = vmatpush.msra.mxu1 %v1094_v63  ;;  %700 = vmatpush.msra.mxu2 %v531_v34 }
  0x68   :  { %739 = vmatpush.msra.mxu3 %v1100_v14  ;;  %593 = vmatpush.msra.mxu0 %v1146_v5 }
  0x69   :  { %631 = vmatpush.msra.mxu1 %v1100_v14  ;;  %704 = vmatpush.msra.mxu2 %v537_v19 }
  0x6a   :  { %741 = vmatpush.msra.mxu3 %v1119_v41  ;;  %596 = vmatpush.msra.mxu0 %v1159_v26 }
  0x6b   :  { %633 = vmatpush.msra.mxu1 %v1119_v41  ;;  %708 = vmatpush.msra.mxu2 %v543_v4 }
  0x6c   :  { %743 = vmatpush.msra.mxu3 %v1132_v8  ;;  %710 = vmatmul.f32.vlgmr.msra.gmra.mxu2 %v1161_v12 }
  0x6d   :  { %599 = vmatpush.msra.mxu0 %v1183_v20  ;;  %635 = vmatpush.msra.mxu1 %v1132_v8 }
  0x6e   :  { %745 = vmatpush.msra.mxu3 %v1156_v53  ;;  %602 = vmatmul.f32.vlgmr.msra.gmra.mxu0 %v1180_v55 }
  0x6f   :  { %747 = vmatmul.f32.vlgmr.msra.gmra.mxu3 %v1161_v12  ;;  %637 = vmatpush.msra.mxu1 %v1156_v53 }
  0x70   :  { %641 = vmatmul.f32.vlgmr.msra.gmra.mxu1 %v1201_v16 }
  0xba   :  { %v262_v54 = vpop.f32.mrf.mxu2 }
  0xc8   :  { %v107_v22 = vpop.f32.mrf.mxu0 }
  0xc9   :  { %v108_v36 = vadd.f32 %v107_v22, %v65_v51 }
  0xca   :  { %v208_v31 = vpop.f32.mrf.mxu1 }
  0xcb   :  { %v209_v38 = vadd.f32 %v208_v31, %v108_v36 }
  0xcc   :  { %v301_v60 = vpop.f32.mrf.mxu3 }
  0xcd   :  { %v263_v40 = vadd.f32 %v262_v54, %v209_v38 }
  0xcf   :  { %v302_v50 = vadd.f32 %v301_v60, %v263_v40 }
  0xd1   :  { %v370_v1 = vpop.f32.mrf.mxu0 }
  0xd2   :  { %v371_v8 = vadd.f32 %v370_v1, %v302_v50 }
  0xd4   :  { %v407_v48 = vpop.f32.mrf.mxu1 }
  0xd5   :  { %v408_v53 = vadd.f32 %v407_v48, %v371_v8 }
  0xe6   :  { %v448_v6 = vpop.f32.mrf.mxu2 }
  0xe7   :  { %v449_v25 = vadd.f32 %v448_v6, %v66_v59 }
  0xe9   :  { %v549_v0 = vpop.f32.mrf.mxu3 }
  0xea   :  { %v550_v63 = vadd.f32 %v549_v0, %v449_v25 }
  0xeb   :  { %v603_v14 = vpop.f32.mrf.mxu0 }
  0xec   :  { %v604_v13 = vadd.f32 %v603_v14, %v550_v63 }
  0xed   :  { %v642_v32 = vpop.f32.mrf.mxu1 }
  0xee   :  { %v643_v41 = vadd.f32 %v642_v32, %v604_v13 }
  0xef   :  { %v711_v18 = vpop.f32.mrf.mxu2 }
  0xf0   :  { %v712_v28 = vadd.f32 %v711_v18, %v643_v41 }
  0xf2   :  { %v748_v56 = vpop.f32.mrf.mxu3 }
  0xf3   :  { %v749_v5 = vadd.f32 %v748_v56, %v712_v28 }
  0xf5   :  { %v753_v26 = vrot.slane %v749_v5, 6 }
  0xf7   :  { %v755_v12 = vsel %vm754_vm0, %v408_v53, %v753_v26 }
  0xf8   :  { %757 = vst [vmem:[%s1330_s3] sm:$0xf] %v755_v12 }
  0xf9   :  { %762 = vsyncpa [#allocation3], 1 }

</bundles_post_ra>
